<compile_context>
chip_gen: v5e
topology: v5e:2x2
jax: 0.10.0
libtpu: 0.0.40
codegen_flags: <defaults>
</compile_context>

<pallas_src>
import math
import jax
import jax.numpy as jnp
from jax.experimental import pallas as pl
from jax.experimental.pallas import tpu as pltpu

LANE = 128
SUBLANE = 8


def _round_up(n, m):
    return (n + m - 1) // m * m


# ---------------------------------------------------------------------------
# Fused Pallas kernel: all hidden blocks + final Linear in one body
# ---------------------------------------------------------------------------
def make_fused_kernel(num_hidden):
    def kernel(x_ref, w_ref, s_ref, wf_ref, bf_ref, o_ref):
        h = x_ref[...]                                            # (TB, P) f32
        for l in range(num_hidden):                               # unrolled at trace time
            # bf16 operands feed the MXU; accumulate in f32.
            y = jnp.dot(h.astype(jnp.bfloat16), w_ref[l],
                        preferred_element_type=jnp.float32)       # MXU
            # Folded BN shift + bias add and ReLU stay f32 on the VPU.
            h = jnp.maximum(y + s_ref[l], 0.0)
            # TODO(synk): nn.Dropout is identity in eval mode; training-mode dropout
            # (and BN batch statistics) are intentionally not implemented.
        # Final Linear(width -> 1) as an XLU lane reduction (keeps the MXU free).
        s = jnp.sum(h * wf_ref[...], axis=-1, keepdims=True)      # (TB, 1)
        # Lane-dense store: broadcast across the 128-lane output slab.
        o_ref[...] = s + bf_ref[...]                              # (TB, LANE)

    return kernel


# ---------------------------------------------------------------------------
# Parameter construction (deterministic, mimics the module's __init__ shapes)
# ---------------------------------------------------------------------------
def init_params(key, input_size, width, num_layers, eps=1e-5):
    """Raw per-layer params (unpadded), BN already folded to (scale, shift)."""
    params = []
    in_f = input_size
    w_f = width
    for layer_idx in range(num_layers):
        key, kw, kb, kg, kbeta, km, kv = jax.random.split(key, 7)
        bound = 1.0 / math.sqrt(in_f)
        w = jax.random.uniform(kw, (in_f, w_f), jnp.float32, -bound, bound)
        b = jax.random.uniform(kb, (1, w_f), jnp.float32, -bound, bound)
        gamma = 1.0 + 0.1 * jax.random.normal(kg, (1, w_f), jnp.float32)
        beta = 0.1 * jax.random.normal(kbeta, (1, w_f), jnp.float32)
        running_mean = 0.1 * jax.random.normal(km, (1, w_f), jnp.float32)
        running_var = jnp.abs(1.0 + 0.1 * jax.random.normal(kv, (1, w_f), jnp.float32))
        scale = gamma / jnp.sqrt(running_var + eps)       # eval-mode BN fold
        shift = beta - running_mean * scale
        params.append({"w": w, "b": b, "scale": scale, "shift": shift})
        in_f = w_f
        if layer_idx < num_layers - 1:
            w_f = max(w_f // 2, 1)
    # final Linear(in_f, 1)
    key, kw, kb = jax.random.split(key, 3)
    bound = 1.0 / math.sqrt(in_f)
    w = jax.random.uniform(kw, (in_f, 1), jnp.float32, -bound, bound)
    b = jax.random.uniform(kb, (1, 1), jnp.float32, -bound, bound)
    params.append({"w": w, "b": b})
    return params


def prepare_fused_params(params, input_size):
    """Fold bias/BN into the weights, zero-pad all feature dims to a common lane width P,
    stack the hidden layers into single arrays, and cast the matmul weights to bf16."""
    hidden = params[:-1]
    in_feats = [input_size] + [p["w"].shape[1] for p in hidden[:-1]]
    P = LANE
    for in_f, p in zip(in_feats, hidden):
        P = max(P, _round_up(in_f, LANE), _round_up(p["w"].shape[1], LANE))

    ws, shifts = [], []
    for in_f, p in zip(in_feats, hidden):
        w, b, scale, shift = p["w"], p["b"], p["scale"], p["shift"]
        out_f = w.shape[1]
        w_folded = w * scale                      # fold BN scale column-wise
        shift_folded = b * scale + shift          # fold Linear bias + BN shift
        w_pad = jnp.zeros((P, P), jnp.float32).at[:in_f, :out_f].set(w_folded)
        s_pad = jnp.zeros((1, P), jnp.float32).at[:, :out_f].set(shift_folded)
        ws.append(w_pad)
        shifts.append(s_pad)

    w_stack = jnp.stack(ws).astype(jnp.bfloat16)   # (L, P, P) bf16  -> MXU operands
    s_stack = jnp.stack(shifts)                    # (L, 1, P) f32   -> VPU add

    last = params[-1]
    in_f_last = hidden[-1]["w"].shape[1]
    wf_pad = jnp.zeros((1, P), jnp.float32).at[0, :in_f_last].set(last["w"][:, 0])
    bf_pad = jnp.broadcast_to(last["b"], (1, LANE)).astype(jnp.float32)
    return {"w_stack": w_stack, "s_stack": s_stack,
            "w_final": wf_pad, "b_final": bf_pad, "P": P}


# ---------------------------------------------------------------------------
# Forward pass (single fused pallas_call, batch-tiled "parallel" grid)
# ---------------------------------------------------------------------------
def neural_network_forward(x, fused, batch_tile=256):
    B, F = x.shape
    P = fused["P"]
    L = fused["w_stack"].shape[0]

    # Batch tile: >=256 rows amortizes per-grid-step overhead; clamp for tiny batches.
    TB = min(_round_up(batch_tile, SUBLANE), _round_up(max(B, SUBLANE), SUBLANE))
    B_pad = _round_up(max(B, SUBLANE), TB)
    x_pad = jnp.zeros((B_pad, P), jnp.float32).at[:B, :F].set(x)

    w_stack, s_stack = fused["w_stack"], fused["s_stack"]
    w_final, b_final = fused["w_final"], fused["b_final"]

    grid = (B_pad // TB,)
    # Weights/shifts have constant index_maps, so they remain VMEM-resident across the
    # batch grid; only the x/out tiles stream (double-buffered by the Pallas pipeline).
    # VMEM budget per step ~ L*P*P*2 (bf16 weights) + 2*TB*P*4 + 2*TB*128*4 bytes — tiny
    # here. If widths scale, single-buffer the weights (pipeline_mode=pl.Buffered(1)) and
    # set pltpu.CompilerParams(vmem_limit_bytes=...) to respect v7x's smaller VMEM.
    out = pl.pallas_call(
        make_fused_kernel(L),
        out_shape=jax.ShapeDtypeStruct((B_pad, LANE), jnp.float32),
        grid=grid,
        in_specs=[
            pl.BlockSpec((TB, P), lambda i: (i, 0)),            # x tile streams over batch
            pl.BlockSpec(w_stack.shape, lambda i: (0, 0, 0)),   # resident stacked weights
            pl.BlockSpec(s_stack.shape, lambda i: (0, 0, 0)),   # resident stacked shifts
            pl.BlockSpec(w_final.shape, lambda i: (0, 0)),
            pl.BlockSpec(b_final.shape, lambda i: (0, 0)),
        ],
        out_specs=pl.BlockSpec((TB, LANE), lambda i: (i, 0)),
        compiler_params=pltpu.CompilerParams(
            dimension_semantics=("parallel",)),                 # megacore on v7x
    )(x_pad, w_stack, s_stack, w_final, b_final)

    # Slice the lane-dense (B_pad, 128) slab back to the logical (B, 1) output.
    return out[:B, :1]


# Pure-JAX reference (unfused, unpadded, f32) for a sanity check.
def neural_network_ref(x, params):
    h = x
    for p in params[:-1]:
        h = jnp.maximum((h @ p["w"] + p["b"]) * p["scale"] + p["shift"], 0.0)
    last = params[-1]
    return h @ last["w"] + last["b"]


if __name__ == "__main__":
    input_size = 32
    width = 32
    num_layers = 3
    batch = 8

    key = jax.random.PRNGKey(0)
    key, kx, kp = jax.random.split(key, 3)
    x = jax.random.normal(kx, (batch, input_size), jnp.float32)
    params = init_params(kp, input_size, width, num_layers)
    fused = prepare_fused_params(params, input_size)

    out = neural_network_forward(x, fused)
    out = jax.block_until_ready(out)

    ref = neural_network_ref(x, params)
    assert out.shape == (batch, 1), out.shape
    # bf16 MXU weights => loosened tolerance vs the f32 reference.
    assert jnp.allclose(out, ref, atol=3e-2, rtol=3e-2), "mismatch vs reference"

    print("KERNEL_OK")
</pallas_src>

<mosaic_0001>
module attributes {stable_mosaic.version = 11 : i64} {
  func.func @kernel(%arg0: i32, %arg1: memref<8x128xf32, #tpu.memory_space<vmem>>, %arg2: memref<3x128x128xbf16, #tpu.memory_space<vmem>>, %arg3: memref<3x1x128xf32, #tpu.memory_space<vmem>>, %arg4: memref<1x128xf32, #tpu.memory_space<vmem>>, %arg5: memref<1x128xf32, #tpu.memory_space<vmem>>, %arg6: memref<8x128xf32, #tpu.memory_space<vmem>>) attributes {dimension_semantics = [#tpu.dimension_semantics<parallel>], iteration_bounds = array<i64: 1>, scalar_prefetch = 0 : i64, scratch_operands = 0 : i64, tpu.core_type = #tpu.core_type<tc>, window_params = [{transform_indices = @transform_0, window_bounds = array<i64: 8, 128>}, {pipeline_mode = #tpu.pipeline_mode<synchronous>, transform_indices = @transform_1, window_bounds = array<i64: 3, 128, 128>}, {pipeline_mode = #tpu.pipeline_mode<synchronous>, transform_indices = @transform_2, window_bounds = array<i64: 3, 1, 128>}, {pipeline_mode = #tpu.pipeline_mode<synchronous>, transform_indices = @transform_3, window_bounds = array<i64: 1, 128>}, {pipeline_mode = #tpu.pipeline_mode<synchronous>, transform_indices = @transform_4, window_bounds = array<i64: 1, 128>}, {transform_indices = @transform_5, window_bounds = array<i64: 8, 128>}]} {
    %c0 = arith.constant 0 : index
    %c0_0 = arith.constant 0 : index
    %0 = vector.load %arg1[%c0, %c0_0] : memref<8x128xf32, #tpu.memory_space<vmem>>, vector<8x128xf32>
    %1 = arith.truncf %0 : vector<8x128xf32> to vector<8x128xbf16>
    %c0_1 = arith.constant 0 : index
    %c0_2 = arith.constant 0 : index
    %c0_3 = arith.constant 0 : index
    %2 = vector.load %arg2[%c0_1, %c0_2, %c0_3] : memref<3x128x128xbf16, #tpu.memory_space<vmem>>, vector<1x128x128xbf16>
    %3 = vector.shape_cast %2 : vector<1x128x128xbf16> to vector<128x128xbf16>
    %cst = arith.constant dense<0.000000e+00> : vector<8x128xf32>
    %4 = tpu.matmul %1, %3, %cst {dimension_numbers = #tpu.dot_dimension_numbers<[1], [0], [0], [1], [0, 0, 1, 1], [], []>} : vector<8x128xbf16>, vector<128x128xbf16>, vector<8x128xf32> -> vector<8x128xf32>
    %c0_4 = arith.constant 0 : index
    %c0_5 = arith.constant 0 : index
    %c0_6 = arith.constant 0 : index
    %5 = vector.load %arg3[%c0_4, %c0_5, %c0_6] : memref<3x1x128xf32, #tpu.memory_space<vmem>>, vector<1x1x128xf32>
    %6 = vector.shape_cast %5 : vector<1x1x128xf32> to vector<1x128xf32>
    %7 = vector.broadcast %6 : vector<1x128xf32> to vector<8x128xf32>
    %8 = arith.addf %4, %7 : vector<8x128xf32>
    %cst_7 = arith.constant 0.000000e+00 : f32
    %9 = vector.broadcast %cst_7 : f32 to vector<8x128xf32>
    %10 = arith.maximumf %8, %9 : vector<8x128xf32>
    %11 = arith.truncf %10 : vector<8x128xf32> to vector<8x128xbf16>
    %c1 = arith.constant 1 : index
    %c0_8 = arith.constant 0 : index
    %c0_9 = arith.constant 0 : index
    %12 = vector.load %arg2[%c1, %c0_8, %c0_9] : memref<3x128x128xbf16, #tpu.memory_space<vmem>>, vector<1x128x128xbf16>
    %13 = vector.shape_cast %12 : vector<1x128x128xbf16> to vector<128x128xbf16>
    %cst_10 = arith.constant dense<0.000000e+00> : vector<8x128xf32>
    %14 = tpu.matmul %11, %13, %cst_10 {dimension_numbers = #tpu.dot_dimension_numbers<[1], [0], [0], [1], [0, 0, 1, 1], [], []>} : vector<8x128xbf16>, vector<128x128xbf16>, vector<8x128xf32> -> vector<8x128xf32>
    %c1_11 = arith.constant 1 : index
    %c0_12 = arith.constant 0 : index
    %c0_13 = arith.constant 0 : index
    %15 = vector.load %arg3[%c1_11, %c0_12, %c0_13] : memref<3x1x128xf32, #tpu.memory_space<vmem>>, vector<1x1x128xf32>
    %16 = vector.shape_cast %15 : vector<1x1x128xf32> to vector<1x128xf32>
    %17 = vector.broadcast %16 : vector<1x128xf32> to vector<8x128xf32>
    %18 = arith.addf %14, %17 : vector<8x128xf32>
    %cst_14 = arith.constant 0.000000e+00 : f32
    %19 = vector.broadcast %cst_14 : f32 to vector<8x128xf32>
    %20 = arith.maximumf %18, %19 : vector<8x128xf32>
    %21 = arith.truncf %20 : vector<8x128xf32> to vector<8x128xbf16>
    %c2 = arith.constant 2 : index
    %c0_15 = arith.constant 0 : index
    %c0_16 = arith.constant 0 : index
    %22 = vector.load %arg2[%c2, %c0_15, %c0_16] : memref<3x128x128xbf16, #tpu.memory_space<vmem>>, vector<1x128x128xbf16>
    %23 = vector.shape_cast %22 : vector<1x128x128xbf16> to vector<128x128xbf16>
    %cst_17 = arith.constant dense<0.000000e+00> : vector<8x128xf32>
    %24 = tpu.matmul %21, %23, %cst_17 {dimension_numbers = #tpu.dot_dimension_numbers<[1], [0], [0], [1], [0, 0, 1, 1], [], []>} : vector<8x128xbf16>, vector<128x128xbf16>, vector<8x128xf32> -> vector<8x128xf32>
    %c2_18 = arith.constant 2 : index
    %c0_19 = arith.constant 0 : index
    %c0_20 = arith.constant 0 : index
    %25 = vector.load %arg3[%c2_18, %c0_19, %c0_20] : memref<3x1x128xf32, #tpu.memory_space<vmem>>, vector<1x1x128xf32>
    %26 = vector.shape_cast %25 : vector<1x1x128xf32> to vector<1x128xf32>
    %27 = vector.broadcast %26 : vector<1x128xf32> to vector<8x128xf32>
    %28 = arith.addf %24, %27 : vector<8x128xf32>
    %cst_21 = arith.constant 0.000000e+00 : f32
    %29 = vector.broadcast %cst_21 : f32 to vector<8x128xf32>
    %30 = arith.maximumf %28, %29 : vector<8x128xf32>
    %c0_22 = arith.constant 0 : index
    %c0_23 = arith.constant 0 : index
    %31 = vector.load %arg4[%c0_22, %c0_23] : memref<1x128xf32, #tpu.memory_space<vmem>>, vector<1x128xf32>
    %32 = vector.broadcast %31 : vector<1x128xf32> to vector<8x128xf32>
    %33 = arith.mulf %30, %32 : vector<8x128xf32>
    %cst_24 = arith.constant dense<0.000000e+00> : vector<8xf32>
    %34 = vector.multi_reduction <add>, %33, %cst_24 [1] : vector<8x128xf32> to vector<8xf32>
    %35 = vector.shape_cast %34 : vector<8xf32> to vector<8x1xf32>
    %c0_25 = arith.constant 0 : index
    %c0_26 = arith.constant 0 : index
    %36 = vector.load %arg5[%c0_25, %c0_26] : memref<1x128xf32, #tpu.memory_space<vmem>>, vector<1x128xf32>
    %37 = vector.broadcast %35 : vector<8x1xf32> to vector<8x128xf32>
    %38 = vector.broadcast %36 : vector<1x128xf32> to vector<8x128xf32>
    %39 = arith.addf %37, %38 : vector<8x128xf32>
    %c0_27 = arith.constant 0 : index
    %c0_28 = arith.constant 0 : index
    %40 = vector.load %arg6[%c0_27, %c0_28] : memref<8x128xf32, #tpu.memory_space<vmem>>, vector<8x128xf32>
    tpu.vector_store %arg6[%c0_27, %c0_28], %39 {strides = array<i32>} : memref<8x128xf32, #tpu.memory_space<vmem>>, vector<8x128xf32>,
    return
  }
  func.func @transform_0(%arg0: i32) -> (i32, i32) {
    %c0_i32 = arith.constant 0 : i32
    %c0_i32_0 = arith.constant 0 : i32
    return %arg0, %c0_i32 : i32, i32
  }
  func.func @transform_1(%arg0: i32) -> (i32, i32, i32) {
    %c0_i32 = arith.constant 0 : i32
    %c0_i32_0 = arith.constant 0 : i32
    %c0_i32_1 = arith.constant 0 : i32
    %c0_i32_2 = arith.constant 0 : i32
    return %c0_i32, %c0_i32_0, %c0_i32_1 : i32, i32, i32
  }
  func.func @transform_2(%arg0: i32) -> (i32, i32, i32) {
    %c0_i32 = arith.constant 0 : i32
    %c0_i32_0 = arith.constant 0 : i32
    %c0_i32_1 = arith.constant 0 : i32
    %c0_i32_2 = arith.constant 0 : i32
    return %c0_i32, %c0_i32_0, %c0_i32_1 : i32, i32, i32
  }
  func.func @transform_3(%arg0: i32) -> (i32, i32) {
    %c0_i32 = arith.constant 0 : i32
    %c0_i32_0 = arith.constant 0 : i32
    %c0_i32_1 = arith.constant 0 : i32
    return %c0_i32, %c0_i32_0 : i32, i32
  }
  func.func @transform_4(%arg0: i32) -> (i32, i32) {
    %c0_i32 = arith.constant 0 : i32
    %c0_i32_0 = arith.constant 0 : i32
    %c0_i32_1 = arith.constant 0 : i32
    return %c0_i32, %c0_i32_0 : i32, i32
  }
  func.func @transform_5(%arg0: i32) -> (i32, i32) {
    %c0_i32 = arith.constant 0 : i32
    %c0_i32_0 = arith.constant 0 : i32
    return %arg0, %c0_i32 : i32, i32
  }
}

</mosaic_0001>

<bundles_post_ra>
// kernel: tpu_custom_call.1
= control target key start
LH: loop header
LB: loop body
LE: loop exit
PB: predicated region body
PF: predicated region fallthrough
CT: control target
= control target key end

     0   :  { %10 = vsyncpa [#allocation3], 0  ;;  %s642_s0 = inlined_call_operand.hbm [shape: f32[8,128], index: 0, kind: input, shape index: {}]   ;;  %s643_s1 = inlined_call_operand.hbm [shape: bf16[3,128,128], index: 1, kind: input, shape index: {}]   ;;  %s644_s2 = inlined_call_operand.hbm [shape: f32[3,1,128], index: 2, kind: input, shape index: {}]   ;;  %s645_s3 = inlined_call_operand.vmem [shape: f32[1,128], index: 3, kind: input, shape index: {}]   ;;  %s646_s4 = inlined_call_operand.vmem [shape: f32[1,128], index: 4, kind: input, shape index: {}]   ;;  %s647_s5 = inlined_call_operand.hbm [shape: f32[8,128], index: 5, kind: output, shape index: {}]  }
   0x1   :  { %11 = vsyncpa [#allocation6], 0  ;;  %s28_s20 = sshll.u32 %s643_s1, 4  ;;  %s29_s20 = int_to_ptr.hbm [resolvable:$true] %s28_s20 }
   0x2   :  { %12 = vsyncpa [#allocation4], 0  ;;  %s586_s21 = smov [#allocation5]   ;;  %s18_s25 = sshll.u32 %s642_s0, 4  ;;  %s19_s25 = int_to_ptr.hbm [resolvable:$true] %s18_s25 }
   0x3   :  { %s30_s22 = sshll.u32 %s586_s21, 4  ;;  %s587_s26 = smov 64   ;;  %s31_s22 = int_to_ptr.vmem [resolvable:$true] %s30_s22 }
   0x4   :  { %s588_s27 = smov 4   ;;  %s589_s28 = smov [#allocation2]  }
   0x5   :  { %36 = dma.hbm_to_vmem [thread:$0]  %s29_s20, 3072, %s31_s22, [#allocation6], %s587_s26, %s587_s26, %s588_s27  }
   0x6   :  { %s20_s29 = sshll.u32 %s589_s28, 4  ;;  %s41_s7 = sshll.u32 %s644_s2, 4  ;;  %s21_s29 = int_to_ptr.vmem [resolvable:$true] %s20_s29  ;;  %s42_s7 = int_to_ptr.hbm [resolvable:$true] %s41_s7 }
   0x7   :  { %23 = dma.hbm_to_vmem [thread:$0]  %s19_s25, 128, %s21_s29, [#allocation3]  }
   0x8   :  { %s590_s1 = smov [#allocation7]   ;;  %s591_s9 = smov 16  }
   0x9   :  { %s43_s8 = sshll.u32 %s590_s1, 4  ;;  %s592_s10 = smov 1   ;;  %s44_s8 = int_to_ptr.vmem [resolvable:$true] %s43_s8 }
   0xa   :  { %49 = dma.hbm_to_vmem [thread:$0]  %s42_s7, 48, %s44_s8, [#allocation6], %s591_s9, %s591_s9, %s592_s10  }
   0xb   :  { %580 = dma.done.wait [#allocation3], 128  }
   0xc   :  { %581 = vsyncadd [#allocation3], 4294967168 }
   0xd   :  { %582 = dma.done.wait [#allocation6], 3120  }
   0xe   :  { %583 = vsyncadd [#allocation6], 4294964176  ;;  %v454_v0 = vld [vmem:[#allocation5 + $0x38] sm:$0xff]  ;;  %v453_v1 = vld [vmem:[#allocation5 + $0x30] sm:$0xff]  ;;  %s593_s13 = smov [#allocation8]   ;;  %s340_s17 = sshll.u32 %s647_s5, 4  ;;  %s341_s17 = int_to_ptr.hbm [resolvable:$true] %s340_s17 }
   0xf   :  { %136 = vmatpush.bf16.msra.mxu0 %v454_v0  ;;  %v462_v2 = vld [vmem:[#allocation5 + $0x78] sm:$0xff]  ;;  %v452_v3 = vld [vmem:[#allocation5 + $0x28] sm:$0xff]  ;;  %v461_v4 = vld [vmem:[#allocation5 + $0x70] sm:$0xff]  ;;  %s338_s14 = sshll.u32 %s593_s13, 4  ;;  %s339_s14 = int_to_ptr.vmem [resolvable:$true] %s338_s14 }
  0x10   :  { %221 = vmatpush.bf16.msra.mxu1 %v462_v2  ;;  %v460_v5 = vld [vmem:[#allocation5 + $0x68] sm:$0xff]  ;;  %v451_v6 = vld [vmem:[#allocation5 + $0x20] sm:$0xff]  ;;  %v450_v8 = vld [vmem:[#allocation5 + $0x18] sm:$0xff] }
  0x11   :  { %v459_v7 = vld [vmem:[#allocation5 + $0x60] sm:$0xff]  ;;  %v458_v9 = vld [vmem:[#allocation5 + $0x58] sm:$0xff]  ;;  %v449_v10 = vld [vmem:[#allocation5 + $0x10] sm:$0xff] }
  0x12   :  { %v457_v11 = vld [vmem:[#allocation5 + $0x50] sm:$0xff]  ;;  %v448_v12 = vld [vmem:[#allocation5 + $0x8] sm:$0xff]  ;;  %v447_v13 = vld [vmem:[#allocation5] sm:$0xff] }
  0x13   :  { %137 = vmatpush.bf16.msra.mxu0 %v453_v1  ;;  %v66_v14 = vld [vmem:[#allocation2] sm:$0xff]  ;;  %v456_v16 = vld [vmem:[#allocation5 + $0x48] sm:$0xff]  ;;  %v455_v17 = vld [vmem:[#allocation5 + $0x40] sm:$0xff] }
  0x14   :  { %222 = vmatpush.bf16.msra.mxu1 %v461_v4  ;;  %v67_v15 = vpack.c.bf16 %v66_v14, %v66_v14  ;;  %v470_v18 = vld [vmem:[#allocation5 + $0xb8] sm:$0xff]  ;;  %v469_v19 = vld [vmem:[#allocation5 + $0xb0] sm:$0xff]  ;;  %v468_v20 = vld [vmem:[#allocation5 + $0xa8] sm:$0xff] }
  0x15   :  { %306 = vmatpush.bf16.msra.mxu2 %v470_v18  ;;  %v467_v21 = vld [vmem:[#allocation5 + $0xa0] sm:$0xff]  ;;  %v466_v22 = vld [vmem:[#allocation5 + $0x98] sm:$0xff]  ;;  %v465_v23 = vld [vmem:[#allocation5 + $0x90] sm:$0xff] }
  0x16   :  { %v479_v24 = vld [vmem:[#allocation7] ss:$0 sm:$0xff]  ;;  %v464_v30 = vld [vmem:[#allocation5 + $0x88] sm:$0xff]  ;;  %v480_v32 = vld [vmem:[#allocation7 + $0x1] ss:$0 sm:$0xff] }
  0x17   :  { %138 = vmatpush.bf16.msra.mxu0 %v452_v3  ;;  %v463_v31 = vld [vmem:[#allocation5 + $0x80] sm:$0xff]  ;;  %v482_v41 = vld [vmem:[%s645_s3] ss:$0 sm:$0xff] }
  0x18   :  { %223 = vmatpush.bf16.msra.mxu1 %v460_v5  ;;  %v481_v38 = vld [vmem:[#allocation7 + $0x2] ss:$0 sm:$0xff]  ;;  %v483_v45 = vld [vmem:[%s646_s4] ss:$0 sm:$0xff] }
  0x19   :  { %307 = vmatpush.bf16.msra.mxu2 %v469_v19 }
  0x1b   :  { %139 = vmatpush.bf16.msra.mxu0 %v451_v6 }
  0x1c   :  { %224 = vmatpush.bf16.msra.mxu1 %v459_v7 }
  0x1d   :  { %308 = vmatpush.bf16.msra.mxu2 %v468_v20 }
  0x1f   :  { %140 = vmatpush.bf16.msra.mxu0 %v450_v8 }
  0x20   :  { %225 = vmatpush.bf16.msra.mxu1 %v458_v9 }
  0x21   :  { %309 = vmatpush.bf16.msra.mxu2 %v467_v21 }
  0x23   :  { %141 = vmatpush.bf16.msra.mxu0 %v449_v10 }
  0x24   :  { %226 = vmatpush.bf16.msra.mxu1 %v457_v11 }
  0x25   :  { %310 = vmatpush.bf16.msra.mxu2 %v466_v22 }
  0x27   :  { %142 = vmatpush.bf16.msra.mxu0 %v448_v12 }
  0x28   :  { %227 = vmatpush.bf16.msra.mxu1 %v456_v16 }
  0x29   :  { %311 = vmatpush.bf16.msra.mxu2 %v465_v23 }
  0x2b   :  { %143 = vmatpush.bf16.msra.mxu0 %v447_v13 }
  0x2c   :  { %228 = vmatpush.bf16.msra.mxu1 %v455_v17 }
  0x2d   :  { %312 = vmatpush.bf16.msra.mxu2 %v464_v30 }
  0x2e   :  { %144 = vmatmul.bf16.vlgmr.msra.gmra.mxu0 %v67_v15 }
  0x31   :  { %313 = vmatpush.bf16.msra.mxu2 %v463_v31 }
  0xab   :  { %v145_v25 = vpop.f32.mrf.mxu0 }
  0xac   :  { %v146_v26 = vadd.f32 %v479_v24, %v145_v25 }
  0xae   :  { %v149_v27 = vmax.f32 %v146_v26, 0.0 }
  0xb0   :  { %v150_v28 = vpack.c.bf16 %v149_v27, %v149_v27 }
  0xb2   :  { %229 = vmatmul.bf16.vlgmr.msra.gmra.mxu1 %v150_v28 }
  0xb3   :  { %v147_v29 = vpop.f32.mrf.mxu0 }
 0x12f   :  { %v230_v33 = vpop.f32.mrf.mxu1 }
 0x130   :  { %v231_v34 = vadd.f32 %v480_v32, %v230_v33 }
 0x132   :  { %v234_v35 = vmax.f32 %v231_v34, 0.0 }
 0x134   :  { %v235_v36 = vpack.c.bf16 %v234_v35, %v234_v35 }
 0x136   :  { %314 = vmatmul.bf16.vlgmr.msra.gmra.mxu2 %v235_v36 }
 0x137   :  { %v232_v37 = vpop.f32.mrf.mxu1 }
 0x1b9   :  { %v315_v39 = vpop.f32.mrf.mxu2 }
 0x1ba   :  { %v316_v40 = vadd.f32 %v481_v38, %v315_v39 }
 0x1bc   :  { %v319_v42 = vmax.f32 %v316_v40, 0.0 }
 0x1be   :  { %v324_v43 = vmul.f32 %v482_v41, %v319_v42 }
 0x1c0   :  { %325 = vadd.xlane.f32.xlu0 %v324_v43 }
 0x1c1   :  { %v317_v44 = vpop.f32.mrf.mxu2 }
 0x233   :  { %v326_v46 = vpop.xlane.xlu0 %325 }
 0x234   :  { %v331_v47 = vadd.f32 %v483_v45, %v326_v46 }
 0x236   :  { %332 = vst [vmem:[#allocation8] sm:$0xff] %v331_v47 }
 0x237   :  { %343 = dma.vmem_to_hbm [thread:$0]  %s339_s14, 128, %s341_s17, [#allocation4]  }
 0x238   :  { %584 = dma.done.wait [#allocation4], 128  }
 0x239   :  { %585 = vsyncadd [#allocation4], 4294967168 }
 0x23a   :  { %348 = vsyncpa [#allocation3], 1 }
 0x23b   :  { %349 = vsyncpa [#allocation6], 1 }
 0x23c   :  { %350 = vsyncpa [#allocation4], 1 }

</bundles_post_ra>
